<compile_context>
chip_gen: v5e
topology: v5e:2x2
jax: 0.10.0
libtpu: 0.0.40
codegen_flags: <defaults>
</compile_context>

<pallas_src>
import functools

import jax
import jax.numpy as jnp
from jax import lax
from jax.experimental import pallas as pl
from jax.experimental.pallas import tpu as pltpu

BN_EPS = 1e-5


def _round_up(x, m):
    return ((x + m - 1) // m) * m


def _pick_cout_tile(c_out_p, cap=128):
    """Largest multiple-of-8 tile <= cap dividing c_out_p (else the whole thing)."""
    if c_out_p <= cap:
        return c_out_p
    for cand in range(cap, 7, -8):
        if c_out_p % cand == 0:
            return cand
    return c_out_p


def _conv_bn_kernel(lidx_ref, x_ref, w_ref, gamma_ref, beta_ref, o_ref, *,
                    L, K, NL, gemm_dtype):
    # lidx_ref:  (1, NLP) int32  within-sample position; padded cols = big negative
    # x_ref:     (C_in_p, NLP)   channel-major, zero-padded, UNPADDED-in-L input
    # w_ref:     (TCO, K*C_in_p) im2col weight block
    # gamma_ref: (TCO, 1)
    # beta_ref:  (TCO, 1)
    # o_ref:     (TCO, NLP)      lane-dense channel-major output block
    _, nlp = x_ref.shape
    pad_left = (K - 1) // 2

    x = x_ref[...]
    l_idx = lidx_ref[...]  # (1, nlp)

    # ---- im2col ("same" padding via XLU roll + per-tap boundary mask) ----
    # Row (j*C_in_p + c) of xcol holds x[c, n, l + j - pad_left], zero out of range.
    cols = []
    for j in range(K):  # K small & static -> unrolled
        off = j - pad_left
        if off == 0:
            cols.append(x)  # padded columns of x are already zero
        else:
            rolled = pltpu.roll(x, (-off) % nlp, axis=1)
            lj = l_idx + off
            valid = (lj >= 0) & (lj < L)          # (1, nlp); sentinel kills lane padding
            cols.append(jnp.where(valid, rolled, 0.0))
    xcol = jnp.concatenate(cols, axis=0)          # (K*C_in_p, nlp), tile-aligned rows

    # ---- Conv1d as a single MXU GEMM over the K*C_in_p contraction dim ----
    # gemm_dtype=bf16 is the fast MXU path on v5e/v6e/v7x; default f32 keeps the
    # module's numerics bit-comparable.  Accumulation is always f32.
    w = w_ref[...]
    if gemm_dtype != jnp.float32:
        w = w.astype(gemm_dtype)
        xcol = xcol.astype(gemm_dtype)
    acc = jnp.dot(w, xcol, preferred_element_type=jnp.float32)  # (TCO, nlp)
    # NOTE: conv bias intentionally omitted -- it cancels exactly under
    # training-mode BatchNorm1d (batch statistics over (N, L)).

    # ---- BatchNorm1d (training-mode batch stats), fused 2-pass epilogue ----
    # Padded columns contribute exact zeros to both sums; divide by the REAL NL.
    inv_nl = jnp.float32(1.0 / NL)
    mean = jnp.sum(acc, axis=1, keepdims=True) * inv_nl                 # (TCO, 1)
    msq = jnp.sum(acc * acc, axis=1, keepdims=True) * inv_nl            # (TCO, 1)
    var = jnp.maximum(msq - mean * mean, 0.0)
    scale = gamma_ref[...] * lax.rsqrt(var + jnp.float32(BN_EPS))       # (TCO, 1)
    shift = beta_ref[...] - mean * scale                                # (TCO, 1)
    o_ref[...] = (acc * scale + shift).astype(o_ref.dtype)


def sampadding_conv1d_bn(x, weight, bias, gamma, beta, *, gemm_dtype=jnp.float32):
    """x: (N, C_in, L); weight: (C_out, C_in, K); bias/gamma/beta: (C_out,).

    Returns (N, C_out, L), matching the PyTorch module's forward with
    training-mode (batch-statistics) BatchNorm1d.
    """
    n, c_in, l = x.shape
    c_out, _, k = weight.shape
    nl = n * l
    del bias  # exact no-op under training-mode BN (cancelled by mean subtraction)

    # ---- alignment padding (sublanes: multiples of 8; lanes: multiples of 128) ----
    c_in_p = _round_up(c_in, 8)
    c_out_p = _round_up(c_out, 8)
    nlp = _round_up(nl, 128)
    kcp = k * c_in_p

    # Channel-major lane-dense slab, zero-padded rows/cols.
    x_cm = jnp.transpose(x, (1, 0, 2)).reshape(c_in, nl)
    x_cm = jnp.pad(x_cm, ((0, c_in_p - c_in), (0, nlp - nl)))            # (C_in_p, NLP)

    # im2col weights: column (j*C_in_p + c) multiplies tap j of input channel c.
    w_p = jnp.pad(weight, ((0, c_out_p - c_out), (0, c_in_p - c_in), (0, 0)))
    w2 = jnp.transpose(w_p, (0, 2, 1)).reshape(c_out_p, kcp)             # (C_out_p, K*C_in_p)

    g2 = jnp.pad(gamma, (0, c_out_p - c_out)).reshape(c_out_p, 1)
    be2 = jnp.pad(beta, (0, c_out_p - c_out)).reshape(c_out_p, 1)

    # Within-sample position per flattened column (no in-kernel modulo);
    # sentinel in padded columns invalidates every tap mask there.
    l_idx = jnp.tile(jnp.arange(l, dtype=jnp.int32), n)
    l_idx = jnp.pad(l_idx, (0, nlp - nl), constant_values=-(1 << 20))
    l_idx = l_idx.reshape(1, nlp)

    # ---- channel-parallel grid over C_out tiles ----
    tco = _pick_cout_tile(c_out_p)
    grid = (c_out_p // tco,)

    # Advisory cost estimate for XLA scheduling around the custom call.
    flops = 2 * c_out_p * kcp * nlp + 6 * c_out_p * nlp
    bytes_accessed = 4 * (c_in_p * nlp + nlp + c_out_p * kcp + 2 * c_out_p + c_out_p * nlp)
    cost = pl.CostEstimate(flops=int(flops), transcendentals=int(c_out_p),
                           bytes_accessed=int(bytes_accessed))

    # VMEM sizing: ~2x the real footprint, clamped below v7x's 64 MiB physical.
    buf_bytes = 4 * (c_in_p * nlp * (k + 1) + nlp + c_out_p * kcp
                     + 2 * c_out_p + 2 * tco * nlp)
    vmem_limit = int(min(max(2 * buf_bytes, 4 * 1024 * 1024), 48 * 1024 * 1024))

    out2d = pl.pallas_call(
        functools.partial(_conv_bn_kernel, L=l, K=k, NL=nl, gemm_dtype=gemm_dtype),
        out_shape=jax.ShapeDtypeStruct((c_out_p, nlp), jnp.float32),
        grid=grid,
        in_specs=[
            pl.BlockSpec((1, nlp), lambda i: (0, 0)),          # l_idx (resident)
            pl.BlockSpec((c_in_p, nlp), lambda i: (0, 0)),     # x slab (resident)
            pl.BlockSpec((tco, kcp), lambda i: (i, 0)),        # weight block
            pl.BlockSpec((tco, 1), lambda i: (i, 0)),          # gamma block
            pl.BlockSpec((tco, 1), lambda i: (i, 0)),          # beta block
        ],
        out_specs=pl.BlockSpec((tco, nlp), lambda i: (i, 0)),
        compiler_params=pltpu.CompilerParams(
            dimension_semantics=("parallel",),                 # BN stats per-channel
            vmem_limit_bytes=vmem_limit,
        ),
        cost_estimate=cost,
    )(l_idx, x_cm, w2, g2, be2)

    # Trim alignment padding and restore PyTorch layout (N, C_out, L).
    return jnp.transpose(out2d[:c_out, :nl].reshape(c_out, n, l), (1, 0, 2))


def _reference(x, weight, bias, gamma, beta):
    """Plain-JAX reference mirroring the PyTorch forward (training-mode BN)."""
    c_out, _, k = weight.shape
    pad_left = (k - 1) // 2
    pad_right = k // 2
    x_pad = jnp.pad(x, ((0, 0), (0, 0), (pad_left, pad_right)))
    y = lax.conv_general_dilated(
        x_pad, weight, window_strides=(1,), padding="VALID",
        dimension_numbers=("NCH", "OIH", "NCH"),
    ) + bias.reshape(1, c_out, 1)
    mean = jnp.mean(y, axis=(0, 2), keepdims=True)
    var = jnp.mean((y - mean) ** 2, axis=(0, 2), keepdims=True)
    return gamma.reshape(1, c_out, 1) * (y - mean) / jnp.sqrt(var + BN_EPS) \
        + beta.reshape(1, c_out, 1)


if __name__ == "__main__":
    # Small shapes consistent with the module: Conv1d over (N, C_in, L).
    N, C_IN, C_OUT, L, K = 2, 4, 8, 16, 5

    key = jax.random.PRNGKey(0)
    kx, kw, kb = jax.random.split(key, 3)

    x = jax.random.normal(kx, (N, C_IN, L), dtype=jnp.float32)

    # Deterministic parameter init (PyTorch-like uniform bound for conv).
    fan_in = C_IN * K
    bound = 1.0 / (fan_in ** 0.5)
    weight = jax.random.uniform(kw, (C_OUT, C_IN, K), jnp.float32, -bound, bound)
    bias = jax.random.uniform(kb, (C_OUT,), jnp.float32, -bound, bound)
    gamma = jnp.ones((C_OUT,), jnp.float32)   # BatchNorm1d weight init
    beta = jnp.zeros((C_OUT,), jnp.float32)   # BatchNorm1d bias init

    out = sampadding_conv1d_bn(x, weight, bias, gamma, beta)
    out = jax.block_until_ready(out)

    ref = _reference(x, weight, bias, gamma, beta)
    assert out.shape == (N, C_OUT, L)
    assert jnp.allclose(out, ref, atol=1e-4, rtol=1e-4), \
        float(jnp.max(jnp.abs(out - ref)))

    print("KERNEL_OK")
</pallas_src>

<mosaic_0001>
module attributes {stable_mosaic.version = 11 : i64} {
  func.func @_conv_bn_kernel(%arg0: i32, %arg1: memref<1x128xi32, #tpu.memory_space<vmem>>, %arg2: memref<8x128xf32, #tpu.memory_space<vmem>>, %arg3: memref<8x40xf32, #tpu.memory_space<vmem>>, %arg4: memref<8x1xf32, #tpu.memory_space<vmem>>, %arg5: memref<8x1xf32, #tpu.memory_space<vmem>>, %arg6: memref<8x128xf32, #tpu.memory_space<vmem>>) attributes {dimension_semantics = [#tpu.dimension_semantics<parallel>], iteration_bounds = array<i64: 1>, scalar_prefetch = 0 : i64, scratch_operands = 0 : i64, tpu.core_type = #tpu.core_type<tc>, window_params = [{pipeline_mode = #tpu.pipeline_mode<synchronous>, transform_indices = @transform_0, window_bounds = array<i64: 1, 128>}, {pipeline_mode = #tpu.pipeline_mode<synchronous>, transform_indices = @transform_1, window_bounds = array<i64: 8, 128>}, {transform_indices = @transform_2, window_bounds = array<i64: 8, 40>}, {transform_indices = @transform_3, window_bounds = array<i64: 8, 1>}, {transform_indices = @transform_4, window_bounds = array<i64: 8, 1>}, {transform_indices = @transform_5, window_bounds = array<i64: 8, 128>}]} {
    %c0 = arith.constant 0 : index
    %c0_0 = arith.constant 0 : index
    %0 = vector.load %arg2[%c0, %c0_0] : memref<8x128xf32, #tpu.memory_space<vmem>>, vector<8x128xf32>
    %c0_1 = arith.constant 0 : index
    %c0_2 = arith.constant 0 : index
    %1 = vector.load %arg1[%c0_1, %c0_2] : memref<1x128xi32, #tpu.memory_space<vmem>>, vector<1x128xi32>
    %c2_i32 = arith.constant 2 : i32
    %2 = tpu.dynamic_rotate %0 by %c2_i32 dim 1 : vector<8x128xf32>, i32 -> vector<8x128xf32>
    %c-2_i32 = arith.constant -2 : i32
    %3 = vector.broadcast %c-2_i32 : i32 to vector<1x128xi32>
    %4 = arith.addi %1, %3 : vector<1x128xi32>
    %c0_i32 = arith.constant 0 : i32
    %5 = vector.broadcast %c0_i32 : i32 to vector<1x128xi32>
    %6 = arith.cmpi sge, %4, %5 : vector<1x128xi32>
    %c16_i32 = arith.constant 16 : i32
    %7 = vector.broadcast %c16_i32 : i32 to vector<1x128xi32>
    %8 = arith.cmpi slt, %4, %7 : vector<1x128xi32>
    %9 = arith.andi %6, %8 : vector<1x128xi1>
    %cst = arith.constant 0.000000e+00 : f32
    %10 = vector.shape_cast %9 : vector<1x128xi1> to vector<1x128xi1>
    %11 = vector.broadcast %10 : vector<1x128xi1> to vector<8x128xi1>
    %12 = vector.broadcast %cst : f32 to vector<8x128xf32>
    %13 = arith.select %11, %2, %12 : vector<8x128xi1>, vector<8x128xf32>
    %c1_i32 = arith.constant 1 : i32
    %14 = tpu.dynamic_rotate %0 by %c1_i32 dim 1 : vector<8x128xf32>, i32 -> vector<8x128xf32>
    %c-1_i32 = arith.constant -1 : i32
    %15 = vector.broadcast %c-1_i32 : i32 to vector<1x128xi32>
    %16 = arith.addi %1, %15 : vector<1x128xi32>
    %c0_i32_3 = arith.constant 0 : i32
    %17 = vector.broadcast %c0_i32_3 : i32 to vector<1x128xi32>
    %18 = arith.cmpi sge, %16, %17 : vector<1x128xi32>
    %c16_i32_4 = arith.constant 16 : i32
    %19 = vector.broadcast %c16_i32_4 : i32 to vector<1x128xi32>
    %20 = arith.cmpi slt, %16, %19 : vector<1x128xi32>
    %21 = arith.andi %18, %20 : vector<1x128xi1>
    %cst_5 = arith.constant 0.000000e+00 : f32
    %22 = vector.shape_cast %21 : vector<1x128xi1> to vector<1x128xi1>
    %23 = vector.broadcast %22 : vector<1x128xi1> to vector<8x128xi1>
    %24 = vector.broadcast %cst_5 : f32 to vector<8x128xf32>
    %25 = arith.select %23, %14, %24 : vector<8x128xi1>, vector<8x128xf32>
    %c127_i32 = arith.constant 127 : i32
    %26 = tpu.dynamic_rotate %0 by %c127_i32 dim 1 : vector<8x128xf32>, i32 -> vector<8x128xf32>
    %c1_i32_6 = arith.constant 1 : i32
    %27 = vector.broadcast %c1_i32_6 : i32 to vector<1x128xi32>
    %28 = arith.addi %1, %27 : vector<1x128xi32>
    %c0_i32_7 = arith.constant 0 : i32
    %29 = vector.broadcast %c0_i32_7 : i32 to vector<1x128xi32>
    %30 = arith.cmpi sge, %28, %29 : vector<1x128xi32>
    %c16_i32_8 = arith.constant 16 : i32
    %31 = vector.broadcast %c16_i32_8 : i32 to vector<1x128xi32>
    %32 = arith.cmpi slt, %28, %31 : vector<1x128xi32>
    %33 = arith.andi %30, %32 : vector<1x128xi1>
    %cst_9 = arith.constant 0.000000e+00 : f32
    %34 = vector.shape_cast %33 : vector<1x128xi1> to vector<1x128xi1>
    %35 = vector.broadcast %34 : vector<1x128xi1> to vector<8x128xi1>
    %36 = vector.broadcast %cst_9 : f32 to vector<8x128xf32>
    %37 = arith.select %35, %26, %36 : vector<8x128xi1>, vector<8x128xf32>
    %c126_i32 = arith.constant 126 : i32
    %38 = tpu.dynamic_rotate %0 by %c126_i32 dim 1 : vector<8x128xf32>, i32 -> vector<8x128xf32>
    %c2_i32_10 = arith.constant 2 : i32
    %39 = vector.broadcast %c2_i32_10 : i32 to vector<1x128xi32>
    %40 = arith.addi %1, %39 : vector<1x128xi32>
    %c0_i32_11 = arith.constant 0 : i32
    %41 = vector.broadcast %c0_i32_11 : i32 to vector<1x128xi32>
    %42 = arith.cmpi sge, %40, %41 : vector<1x128xi32>
    %c16_i32_12 = arith.constant 16 : i32
    %43 = vector.broadcast %c16_i32_12 : i32 to vector<1x128xi32>
    %44 = arith.cmpi slt, %40, %43 : vector<1x128xi32>
    %45 = arith.andi %42, %44 : vector<1x128xi1>
    %cst_13 = arith.constant 0.000000e+00 : f32
    %46 = vector.shape_cast %45 : vector<1x128xi1> to vector<1x128xi1>
    %47 = vector.broadcast %46 : vector<1x128xi1> to vector<8x128xi1>
    %48 = vector.broadcast %cst_13 : f32 to vector<8x128xf32>
    %49 = arith.select %47, %38, %48 : vector<8x128xi1>, vector<8x128xf32>
    %50 = tpu.concatenate %13, %25, %0, %37, %49 in 0 : vector<8x128xf32>, vector<8x128xf32>, vector<8x128xf32>, vector<8x128xf32>, vector<8x128xf32> -> vector<40x128xf32>
    %c0_14 = arith.constant 0 : index
    %c0_15 = arith.constant 0 : index
    %51 = vector.load %arg3[%c0_14, %c0_15] : memref<8x40xf32, #tpu.memory_space<vmem>>, vector<8x40xf32>
    %cst_16 = arith.constant dense<0.000000e+00> : vector<8x128xf32>
    %52 = tpu.matmul %51, %50, %cst_16 {dimension_numbers = #tpu.dot_dimension_numbers<[1], [0], [0], [1], [0, 0, 1, 1], [], []>} : vector<8x40xf32>, vector<40x128xf32>, vector<8x128xf32> -> vector<8x128xf32>
    %cst_17 = arith.constant dense<0.000000e+00> : vector<8xf32>
    %53 = vector.multi_reduction <add>, %52, %cst_17 [1] : vector<8x128xf32> to vector<8xf32>
    %54 = vector.shape_cast %53 : vector<8xf32> to vector<8x1xf32>
    %cst_18 = arith.constant 3.125000e-02 : f32
    %55 = vector.broadcast %cst_18 : f32 to vector<8x1xf32>
    %56 = arith.mulf %54, %55 : vector<8x1xf32>
    %57 = arith.mulf %52, %52 : vector<8x128xf32>
    %cst_19 = arith.constant dense<0.000000e+00> : vector<8xf32>
    %58 = vector.multi_reduction <add>, %57, %cst_19 [1] : vector<8x128xf32> to vector<8xf32>
    %59 = vector.shape_cast %58 : vector<8xf32> to vector<8x1xf32>
    %cst_20 = arith.constant 3.125000e-02 : f32
    %60 = vector.broadcast %cst_20 : f32 to vector<8x1xf32>
    %61 = arith.mulf %59, %60 : vector<8x1xf32>
    %62 = arith.mulf %56, %56 : vector<8x1xf32>
    %63 = arith.subf %61, %62 : vector<8x1xf32>
    %cst_21 = arith.constant 0.000000e+00 : f32
    %64 = vector.broadcast %cst_21 : f32 to vector<8x1xf32>
    %65 = arith.maximumf %63, %64 : vector<8x1xf32>
    %c0_22 = arith.constant 0 : index
    %c0_23 = arith.constant 0 : index
    %66 = vector.load %arg4[%c0_22, %c0_23] : memref<8x1xf32, #tpu.memory_space<vmem>>, vector<8x1xf32>
    %cst_24 = arith.constant 9.99999974E-6 : f32
    %67 = vector.broadcast %cst_24 : f32 to vector<8x1xf32>
    %68 = arith.addf %65, %67 : vector<8x1xf32>
    %69 = math.rsqrt %68 : vector<8x1xf32>
    %70 = arith.mulf %66, %69 : vector<8x1xf32>
    %c0_25 = arith.constant 0 : index
    %c0_26 = arith.constant 0 : index
    %71 = vector.load %arg5[%c0_25, %c0_26] : memref<8x1xf32, #tpu.memory_space<vmem>>, vector<8x1xf32>
    %72 = arith.mulf %56, %70 : vector<8x1xf32>
    %73 = arith.subf %71, %72 : vector<8x1xf32>
    %74 = vector.broadcast %70 : vector<8x1xf32> to vector<8x128xf32>
    %75 = arith.mulf %52, %74 : vector<8x128xf32>
    %76 = vector.broadcast %73 : vector<8x1xf32> to vector<8x128xf32>
    %77 = arith.addf %75, %76 : vector<8x128xf32>
    %c0_27 = arith.constant 0 : index
    %c0_28 = arith.constant 0 : index
    %78 = vector.load %arg6[%c0_27, %c0_28] : memref<8x128xf32, #tpu.memory_space<vmem>>, vector<8x128xf32>
    tpu.vector_store %arg6[%c0_27, %c0_28], %77 {strides = array<i32>} : memref<8x128xf32, #tpu.memory_space<vmem>>, vector<8x128xf32>,
    return
  }
  func.func @transform_0(%arg0: i32) -> (i32, i32) {
    %c0_i32 = arith.constant 0 : i32
    %c0_i32_0 = arith.constant 0 : i32
    %c0_i32_1 = arith.constant 0 : i32
    return %c0_i32, %c0_i32_0 : i32, i32
  }
  func.func @transform_1(%arg0: i32) -> (i32, i32) {
    %c0_i32 = arith.constant 0 : i32
    %c0_i32_0 = arith.constant 0 : i32
    %c0_i32_1 = arith.constant 0 : i32
    return %c0_i32, %c0_i32_0 : i32, i32
  }
  func.func @transform_2(%arg0: i32) -> (i32, i32) {
    %c0_i32 = arith.constant 0 : i32
    %c0_i32_0 = arith.constant 0 : i32
    return %arg0, %c0_i32 : i32, i32
  }
  func.func @transform_3(%arg0: i32) -> (i32, i32) {
    %c0_i32 = arith.constant 0 : i32
    %c0_i32_0 = arith.constant 0 : i32
    return %arg0, %c0_i32 : i32, i32
  }
  func.func @transform_4(%arg0: i32) -> (i32, i32) {
    %c0_i32 = arith.constant 0 : i32
    %c0_i32_0 = arith.constant 0 : i32
    return %arg0, %c0_i32 : i32, i32
  }
  func.func @transform_5(%arg0: i32) -> (i32, i32) {
    %c0_i32 = arith.constant 0 : i32
    %c0_i32_0 = arith.constant 0 : i32
    return %arg0, %c0_i32 : i32, i32
  }
}

</mosaic_0001>

<bundles_post_ra>
// kernel: tpu_custom_call.1
= control target key start
LH: loop header
LB: loop body
LE: loop exit
PB: predicated region body
PF: predicated region fallthrough
CT: control target
= control target key end

     0   :  { %s238_s0 = inlined_call_operand.vmem [shape: s32[1,128], index: 0, kind: input, shape index: {}]   ;;  %s239_s1 = inlined_call_operand.vmem [shape: f32[8,128], index: 1, kind: input, shape index: {}]   ;;  %s240_s2 = inlined_call_operand.vmem [shape: f32[8,40], index: 2, kind: input, shape index: {}]   ;;  %s241_s3 = inlined_call_operand.vmem [shape: f32[8,1], index: 3, kind: input, shape index: {}]   ;;  %s242_s4 = inlined_call_operand.vmem [shape: f32[8,1], index: 4, kind: input, shape index: {}]   ;;  %s243_s5 = inlined_call_operand.hbm [shape: f32[8,128], index: 5, kind: output, shape index: {}]  }
   0x1   :  { %v21_v0 = vld [vmem:[%s239_s1] sm:$0xff] }
   0x2   :  { %10 = vsyncpa [#allocation3], 0  ;;  %s184_s20 = smov 126   ;;  %s185_s21 = smov 1   ;;  %v188_v1 = vmov 0   ;;  %v63_v19 = vld [vmem:[%s240_s2] sm:$0xff] }
   0x3   :  { %53 = vrot.lane.b32.xlu0 %v21_v0, %s184_s20  ;;  %33 = vrot.lane.b32.xlu1 %v21_v0, %s185_s21  ;;  %s186_s22 = smov 127   ;;  %s187_s23 = smov 2   ;;  %v22_v2 = vld [vmem:[%s238_s0] sm:$0x1] }
   0x4   :  { %154 = vset.pattern.permute.xlu0 %v188_v1  ;;  %155 = vset.pattern.permute.xlu1 %v188_v1  ;;  %v55_v3 = vadd.s32 2, %v22_v2  ;;  %v45_v4 = vadd.s32 1, %v22_v2  ;;  %v35_v6 = vadd.s32 4294967295, %v22_v2  ;;  %v25_v8 = vadd.s32 4294967294, %v22_v2  ;;  %v98_v35 = vld [vmem:[%s241_s3] sm:$0xff]  ;;  %s189_s29 = smov [#allocation2]  }
   0x5   :  { %v111_v39 = vld [vmem:[%s242_s4] sm:$0xff]  ;;  %s132_s30 = sshll.u32 %s189_s29, 4  ;;  %s134_s8 = sshll.u32 %s243_s5, 4  ;;  %s133_s30 = int_to_ptr.vmem [resolvable:$true] %s132_s30  ;;  %s135_s8 = int_to_ptr.hbm [resolvable:$true] %s134_s8 }
   0x6   :  { %vm56_vm0 = vcmp.ge.s32.totalorder %v55_v3, 0  ;;  %vm57_vm1 = vcmp.lt.s32.totalorder %v55_v3, 16  ;;  %vm46_vm3 = vcmp.ge.s32.totalorder %v45_v4, 0  ;;  %vm47_vm4 = vcmp.lt.s32.totalorder %v45_v4, 16 }
   0x7   :  { %vm58_vm2 = vmand %vm56_vm0, %vm57_vm1  ;;  %vm36_vm6 = vcmp.ge.s32.totalorder %v35_v6, 0  ;;  %vm37_vm7 = vcmp.lt.s32.totalorder %v35_v6, 16  ;;  %vm26_vm9 = vcmp.ge.s32.totalorder %v25_v8, 0  ;;  %vm27_vm10 = vcmp.lt.s32.totalorder %v25_v8, 16 }
   0x8   :  { %v59_v5 = vsel %vm58_vm2, 1, %v188_v1  ;;  %vm48_vm5 = vmand %vm46_vm3, %vm47_vm4  ;;  %vm64_vm0 = vcmask 326656  }
   0x9   :  { %v60_v7 = vperm.slane %v59_v5, 0  ;;  %v49_v9 = vsel %vm48_vm5, 1, %v188_v1  ;;  %vm38_vm11 = vmand %vm36_vm6, %vm37_vm7 }
   0xa   :  { %v50_v12 = vperm.slane %v49_v9, 0  ;;  %vm28_vm12 = vmand %vm26_vm9, %vm27_vm10  ;;  %v39_v13 = vsel %vm38_vm11, 1, %v188_v1 }
   0xb   :  { %43 = vrot.lane.b32.xlu0 %v21_v0, %s186_s22  ;;  %23 = vrot.lane.b32.xlu1 %v21_v0, %s187_s23  ;;  %vm61_vm8 = vcmp.eq.s32.totalorder %v60_v7, 1  ;;  %v29_v14 = vsel %vm28_vm12, 1, %v188_v1  ;;  %v40_v15 = vperm.slane %v39_v13, 0 }
   0xc   :  { %vm51_vm13 = vcmp.eq.s32.totalorder %v50_v12, 1  ;;  %v30_v17 = vperm.slane %v29_v14, 0 }
   0xd   :  { %vm41_vm14 = vcmp.eq.s32.totalorder %v40_v15, 1 }
   0xe   :  { %vm31_vm15 = vcmp.eq.s32.totalorder %v30_v17, 1 }
  0x75   :  { %v54_v10 = vpop.permute.xlu0 %53  ;;  %v34_v11 = vpop.permute.xlu1 %33 }
  0x76   :  { %143 = vmatpush.msk.msra.mxu0 %vm61_vm8, %v54_v10 }
  0x7d   :  { %v44_v16 = vpop.permute.xlu0 %43  ;;  %v24_v18 = vpop.permute.xlu1 %23 }
  0x7e   :  { %144 = vmatpush.msk.msra.mxu0 %vm51_vm13, %v44_v16 }
  0x80   :  { %81 = vmatpush.msra.mxu0 %v21_v0 }
  0x82   :  { %145 = vmatpush.msk.msra.mxu0 %vm41_vm14, %v34_v11 }
  0x84   :  { %146 = vmatpush.msk.msra.mxu0 %vm31_vm15, %v24_v18 }
  0x85   :  { %147 = vmatmul.msk.f32.vlgmr.msra.gmra.mxu0 %vm64_vm0, %v63_v19 }
 0x102   :  { %v85_v20 = vpop.f32.mrf.mxu0 }
 0x103   :  { %88 = vadd.xlane.f32.xlu2 %v85_v20  ;;  %v91_v21 = vmul.f32 %v85_v20, %v85_v20 }
 0x10b   :  { %92 = vadd.xlane.f32.xlu2 %v91_v21 }
 0x176   :  { %v89_v22 = vpop.xlane.xlu2 %88 }
 0x177   :  { %v90_v23 = vmul.f32 0.03125, %v89_v22 }
 0x179   :  { %v95_v25 = vmul.f32 %v90_v23, %v90_v23 }
 0x17e   :  { %v93_v24 = vpop.xlane.xlu2 %92 }
 0x17f   :  { %v94_v26 = vmul.f32 0.03125, %v93_v24 }
 0x181   :  { %v96_v27 = vsub.f32 %v94_v26, %v95_v25 }
 0x183   :  { %v97_v28 = vmax.f32 %v96_v27, 0.0 }
 0x185   :  { %v99_v29 = vadd.f32 1e-05, %v97_v28 }
 0x187   :  { %156 = vrsqrt.f32 %v99_v29  ;;  %vm106_vm2 = vweird.f32 %v99_v29 }
 0x18d   :  { %v157_v30 = vpop.eup %156 }
 0x18e   :  { %v101_v31 = vmul.f32 %v157_v30, %v99_v29  ;;  %vm107_vm1 = vweird.f32 %v157_v30 }
 0x18f   :  { %vm108_vm3 = vmor %vm106_vm2, %vm107_vm1 }
 0x190   :  { %v102_v32 = vmul.f32 %v157_v30, %v101_v31 }
 0x192   :  { %v103_v33 = vmul.f32 0.5, %v102_v32 }
 0x194   :  { %v104_v34 = vsub.f32 1.5, %v103_v33 }
 0x196   :  { %v105_v36 = vmul.f32 %v157_v30, %v104_v34 }
 0x198   :  { %v109_v37 = vsel %vm108_vm3, %v157_v30, %v105_v36 }
 0x199   :  { %v110_v38 = vmul.f32 %v109_v37, %v98_v35 }
 0x19b   :  { %116 = vperm.xlu0 %154, %v110_v38   ;;  %v112_v40 = vmul.f32 %v110_v38, %v90_v23 }
 0x19d   :  { %v113_v41 = vsub.f32 %v111_v39, %v112_v40 }
 0x19f   :  { %122 = vperm.xlu1 %155, %v113_v41  }
 0x20d   :  { %v117_v42 = vpop.permute.xlu0 %116 }
 0x20e   :  { %v119_v43 = vmul.f32 %v117_v42, %v85_v20 }
 0x211   :  { %v123_v44 = vpop.permute.xlu1 %122 }
 0x212   :  { %v125_v45 = vadd.f32 %v123_v44, %v119_v43 }
 0x214   :  { %126 = vst [vmem:[#allocation2] sm:$0xff] %v125_v45 }
 0x215   :  { %137 = dma.vmem_to_hbm [thread:$0]  %s133_s30, 128, %s135_s8, [#allocation3]  }
 0x216   :  { %182 = dma.done.wait [#allocation3], 128  }
 0x217   :  { %183 = vsyncadd [#allocation3], 4294967168 }
 0x218   :  { %142 = vsyncpa [#allocation3], 1 }

</bundles_post_ra>
